<compile_context>
chip_gen: v7x
topology: tpu7x:2x2x1
jax: 0.10.0
libtpu: 0.0.40
codegen_flags: <defaults>
</compile_context>

<pallas_src>
import functools

import jax
import jax.numpy as jnp
from jax.experimental import pallas as pl
from jax.experimental.pallas import tpu as pltpu


# ----------------------------------------------------------------------------
# Kernels
# ----------------------------------------------------------------------------
def _z0_packed_kernel(x_ref, wg_ref, o_ref, *, dx, d_mlp, pack):
    """Lane-dense fused kernel.

    x_ref : (bp, pack*dx)         `pack` consecutive x0 rows folded into one row
    wg_ref: (pack*dx, pack*d_mlp) block-diagonal replicated weight kron(I, W)
    o_ref : (bp, 128)             `pack` consecutive z0 rows folded into one row
    """
    xg = x_ref[...].astype(o_ref.dtype)                              # (bp, pack*dx)
    mg = jnp.dot(x_ref[...], wg_ref[...],
                 preferred_element_type=jnp.float32)                 # (bp, pack*d_mlp)
    mg = mg.astype(o_ref.dtype)
    # Interleave [x0_j | mlp_j] pieces with static lane slices -> one
    # 128-lane-dense tile, stored with unmasked full-width vst.
    pieces = []
    for j in range(pack):
        pieces.append(xg[:, j * dx:(j + 1) * dx])
        pieces.append(mg[:, j * d_mlp:(j + 1) * d_mlp])
    o_ref[...] = jnp.concatenate(pieces, axis=-1)


def _z0_simple_kernel(x_ref, w_ref, o_ref, *, dx):
    """Generic fallback (dz does not divide 128, or N % (128/dz) != 0)."""
    x0 = x_ref[...]
    mlp = jnp.dot(x0, w_ref[...], preferred_element_type=jnp.float32)
    # Direct slice stores: no (TM, dz) concat temporary.
    o_ref[:, :dx] = x0.astype(o_ref.dtype)
    o_ref[:, dx:] = mlp.astype(o_ref.dtype)


# ----------------------------------------------------------------------------
# Wrapper
# ----------------------------------------------------------------------------
def _pick_block(total_rows, target_rows, min_steps=8):
    """Pick a row-block size: as large as possible (amortize the ~0.35 us
    per-grid-step overhead) while keeping >= `min_steps` grid steps so both
    v7x TensorCores get work, and sublane (8) aligned."""
    small = max(8, min(target_rows, 1024))
    if total_rows <= small:
        return total_rows                          # single full-extent block
    per_step = -(-total_rows // min_steps)         # cdiv
    rows = min(target_rows, per_step)
    rows = max(8, (rows // 8) * 8)
    return min(rows, total_rows)


def z0_forward(x0, w_t, *, tm=16384, min_grid_steps=8):
    """Z0Model forward:  z0 = concat([x0, x0 @ w_t], axis=-1).

    x0  : (N, dx)        initial observations
    w_t : (dx, dz-dx)    MLP weight, already transposed (bias=False)
    returns z0 : (N, dz) with dtype == x0.dtype
    """
    n, dx = x0.shape
    d_mlp = w_t.shape[1]
    dz = dx + d_mlp
    out_dtype = x0.dtype

    use_packed = (dz <= 128) and (128 % dz == 0) and (128 // dz > 1) and (
        n % (128 // dz) == 0)

    if use_packed:
        pack = 128 // dz
        np_rows = n // pack
        # Metadata-only reinterpretations of the contiguous row-major buffers.
        x_in = x0.reshape(np_rows, pack * dx)
        # Block-diagonal weight so one matmul handles all `pack` folded rows.
        wg = jnp.kron(jnp.eye(pack, dtype=w_t.dtype), w_t)      # (pack*dx, pack*d_mlp)

        bp = _pick_block(np_rows, max(8, tm // pack), min_grid_steps)
        grid = (pl.cdiv(np_rows, bp),)
        kernel = functools.partial(_z0_packed_kernel, dx=dx, d_mlp=d_mlp, pack=pack)

        out = pl.pallas_call(
            kernel,
            out_shape=jax.ShapeDtypeStruct((np_rows, 128), out_dtype),
            grid=grid,
            in_specs=[
                pl.BlockSpec((bp, pack * dx), lambda i: (i, 0)),
                pl.BlockSpec((pack * dx, pack * d_mlp), lambda i: (0, 0)),
            ],
            out_specs=pl.BlockSpec((bp, 128), lambda i: (i, 0)),
            compiler_params=pltpu.CompilerParams(
                dimension_semantics=("parallel",),
            ),
        )(x_in, wg)
        return out.reshape(n, dz)                   # metadata-only

    # ---- Generic fallback path (still fused, larger tiles, dtype-correct) ----
    # Cap rows so the lane-padded VMEM blocks (narrow dims pad to 128 lanes)
    # stay within v5e's 16 MiB scoped default with double buffering.
    br = _pick_block(n, min(tm, 4096), min_grid_steps)
    grid = (pl.cdiv(n, br),)
    kernel = functools.partial(_z0_simple_kernel, dx=dx)
    return pl.pallas_call(
        kernel,
        out_shape=jax.ShapeDtypeStruct((n, dz), out_dtype),
        grid=grid,
        in_specs=[
            pl.BlockSpec((br, dx), lambda i: (i, 0)),
            pl.BlockSpec((dx, d_mlp), lambda i: (0, 0)),
        ],
        out_specs=pl.BlockSpec((br, dz), lambda i: (i, 0)),
        compiler_params=pltpu.CompilerParams(
            dimension_semantics=("parallel",),
        ),
    )(x0, w_t)


if __name__ == "__main__":
    # Small shapes consistent with the module: batch of initial observations
    # x0 with dx features, latent dimension dz > dx.
    batch, dx, dz = 16, 8, 32

    key = jax.random.PRNGKey(0)
    k_x, k_w, k_x2, k_w2 = jax.random.split(key, 4)
    x0 = jax.random.normal(k_x, (batch, dx), jnp.float32)
    # nn.Linear(dx, dz - dx, bias=False).weight has shape (dz-dx, dx);
    # we store its transpose so the kernel computes x0 @ w_t.
    w_t = 0.1 * jax.random.normal(k_w, (dx, dz - dx), jnp.float32)

    fwd = jax.jit(z0_forward)

    # --- primary (lane-dense packed) path ---
    z0 = fwd(x0, w_t)
    jax.block_until_ready(z0)
    ref = jnp.concatenate([x0, x0 @ w_t], axis=1)
    assert z0.shape == (batch, dz)
    assert z0.dtype == x0.dtype
    assert bool(jnp.allclose(z0, ref, atol=1e-5, rtol=1e-5))

    # --- generic fallback path (dz does not divide 128) ---
    b2, dx2, dz2 = 10, 5, 13
    x2 = jax.random.normal(k_x2, (b2, dx2), jnp.float32)
    w2 = 0.1 * jax.random.normal(k_w2, (dx2, dz2 - dx2), jnp.float32)
    z2 = fwd(x2, w2)
    jax.block_until_ready(z2)
    ref2 = jnp.concatenate([x2, x2 @ w2], axis=1)
    assert z2.shape == (b2, dz2)
    assert bool(jnp.allclose(z2, ref2, atol=1e-5, rtol=1e-5))

    print("KERNEL_OK")
</pallas_src>

<mosaic_0001>
module attributes {stable_mosaic.version = 11 : i64} {
  func.func @_z0_packed_kernel(%arg0: i32, %arg1: memref<4x32xf32, #tpu.memory_space<vmem>>, %arg2: memref<32x96xf32, #tpu.memory_space<vmem>>, %arg3: memref<4x128xf32, #tpu.memory_space<vmem>>) attributes {dimension_semantics = [#tpu.dimension_semantics<parallel>], iteration_bounds = array<i64: 1>, scalar_prefetch = 0 : i64, scratch_operands = 0 : i64, tpu.core_type = #tpu.core_type<tc>, window_params = [{transform_indices = @transform_0, window_bounds = array<i64: 4, 32>}, {pipeline_mode = #tpu.pipeline_mode<synchronous>, transform_indices = @transform_1, window_bounds = array<i64: 32, 96>}, {transform_indices = @transform_2, window_bounds = array<i64: 4, 128>}]} {
    %c0 = arith.constant 0 : index
    %c0_0 = arith.constant 0 : index
    %0 = vector.load %arg1[%c0, %c0_0] : memref<4x32xf32, #tpu.memory_space<vmem>>, vector<4x32xf32>
    %c0_1 = arith.constant 0 : index
    %c0_2 = arith.constant 0 : index
    %1 = vector.load %arg1[%c0_1, %c0_2] : memref<4x32xf32, #tpu.memory_space<vmem>>, vector<4x32xf32>
    %c0_3 = arith.constant 0 : index
    %c0_4 = arith.constant 0 : index
    %2 = vector.load %arg2[%c0_3, %c0_4] : memref<32x96xf32, #tpu.memory_space<vmem>>, vector<32x96xf32>
    %cst = arith.constant dense<0.000000e+00> : vector<4x96xf32>
    %3 = tpu.matmul %1, %2, %cst {dimension_numbers = #tpu.dot_dimension_numbers<[1], [0], [0], [1], [0, 0, 1, 1], [], []>} : vector<4x32xf32>, vector<32x96xf32>, vector<4x96xf32> -> vector<4x96xf32>
    %4 = vector.extract_strided_slice %0 {offsets = [0, 0], sizes = [4, 8], strides = [1, 1]} : vector<4x32xf32> to vector<4x8xf32>
    %5 = vector.extract_strided_slice %3 {offsets = [0, 0], sizes = [4, 24], strides = [1, 1]} : vector<4x96xf32> to vector<4x24xf32>
    %6 = vector.extract_strided_slice %0 {offsets = [0, 8], sizes = [4, 8], strides = [1, 1]} : vector<4x32xf32> to vector<4x8xf32>
    %7 = vector.extract_strided_slice %3 {offsets = [0, 24], sizes = [4, 24], strides = [1, 1]} : vector<4x96xf32> to vector<4x24xf32>
    %8 = vector.extract_strided_slice %0 {offsets = [0, 16], sizes = [4, 8], strides = [1, 1]} : vector<4x32xf32> to vector<4x8xf32>
    %9 = vector.extract_strided_slice %3 {offsets = [0, 48], sizes = [4, 24], strides = [1, 1]} : vector<4x96xf32> to vector<4x24xf32>
    %10 = vector.extract_strided_slice %0 {offsets = [0, 24], sizes = [4, 8], strides = [1, 1]} : vector<4x32xf32> to vector<4x8xf32>
    %11 = vector.extract_strided_slice %3 {offsets = [0, 72], sizes = [4, 24], strides = [1, 1]} : vector<4x96xf32> to vector<4x24xf32>
    %12 = tpu.concatenate %4, %5, %6, %7, %8, %9, %10, %11 in 1 : vector<4x8xf32>, vector<4x24xf32>, vector<4x8xf32>, vector<4x24xf32>, vector<4x8xf32>, vector<4x24xf32>, vector<4x8xf32>, vector<4x24xf32> -> vector<4x128xf32>
    %c0_5 = arith.constant 0 : index
    %c0_6 = arith.constant 0 : index
    %13 = vector.load %arg3[%c0_5, %c0_6] : memref<4x128xf32, #tpu.memory_space<vmem>>, vector<4x128xf32>
    tpu.vector_store %arg3[%c0_5, %c0_6], %12 {strides = array<i32>} : memref<4x128xf32, #tpu.memory_space<vmem>>, vector<4x128xf32>,
    return
  }
  func.func @transform_0(%arg0: i32) -> (i32, i32) {
    %c0_i32 = arith.constant 0 : i32
    %c0_i32_0 = arith.constant 0 : i32
    return %arg0, %c0_i32 : i32, i32
  }
  func.func @transform_1(%arg0: i32) -> (i32, i32) {
    %c0_i32 = arith.constant 0 : i32
    %c0_i32_0 = arith.constant 0 : i32
    %c0_i32_1 = arith.constant 0 : i32
    return %c0_i32, %c0_i32_0 : i32, i32
  }
  func.func @transform_2(%arg0: i32) -> (i32, i32) {
    %c0_i32 = arith.constant 0 : i32
    %c0_i32_0 = arith.constant 0 : i32
    return %arg0, %c0_i32 : i32, i32
  }
}

</mosaic_0001>

<bundles_post_ra>
// kernel: z0_forward.1
= control target key start
LH: loop header
LB: loop body
LE: loop exit
PB: predicated region body
PF: predicated region fallthrough
CT: control target
= control target key end

     0   :  { %v162_v0 = vmov 0.0|0.0   ;;  %vm163_vm0 = vmmov 0   ;;  %v164_v4 = vmov 0.0   ;;  %s165_s19 = smov 48   ;;  %s166_s20 = smov 24   ;;  %vm16_vm1 = vcmask 261120   ;;  %s206_s1 = inlined_call_operand.vmem [shape: f32[32,96], index: 1, kind: input, shape index: {}]   ;;  %s207_s0 = inlined_call_operand.vmem [shape: f32[4,32], index: 0, kind: input, shape index: {}]   ;;  %s208_s2 = inlined_call_operand.vmem [shape: f32[4,128], index: 2, kind: output, shape index: {}]  }
   0x1   :  { %147 = vmatprep.subr.bf16.mxu0 %v162_v0  ;;  %v12_v1 = vld [vmem:[%s206_s1] sm:$0xff]  ;;  %v13_v2 = vld [vmem:[%s206_s1 + $0x8] sm:$0xff]  ;;  %v14_v3 = vld [vmem:[%s206_s1 + $0x10] sm:$0xff]  ;;  %144 = vmatprep.mubr.msk.f32.mxu0 %vm163_vm0, %v164_v4  ;;  %s167_s21 = smov 16   ;;  %s168_s22 = smov 8   ;;  %vm112_vm2 = vcmask 64512  }
   0x2   :  { %v148_v5 = vpack.c.bf16 %v13_v2, %v12_v1  ;;  %v15_v6 = vld [vmem:[%s206_s1 + $0x18] sm:$0xff]  ;;  %v11_v7 = vld [vmem:[%s207_s0] sm:$0xf]  ;;  %s169_s1 = smov 72   ;;  %s170_s0 = smov 32   ;;  %vm115_vm3 = vcmask 326656  }
   0x3   :  { %100 = vrot.lane.b32.xlu1 %v11_v7, %s165_s19  ;;  %94 = vrot.lane.b32.xlu0 %v11_v7, %s166_s20  ;;  %v151_v8 = vpack.c.bf16 %v15_v6, %v14_v3  ;;  %vm117_vm4 = vcmask 523264   ;;  %vm119_vm5 = vcmask 588800   ;;  %vm121_vm6 = vcmask 785408  }
   0x4   :  { %149 = vmatpush3.bf16.msra.mxu0 %v148_v5  ;;  %vm123_vm7 = vcmask 850944  }
   0x5   :  { %150 = vmatprep.subr.bf16.mxu0 %v162_v0 }
   0x8   :  { %152 = vmatpush3.bf16.msra.mxu0 %v151_v8 }
   0xb   :  { %145 = vmatmul.mubr.msk.f32.vlgmr.msra.gmra.mrb[0].mxu0 %vm16_vm1, %v11_v7 }
  0x75   :  { %v101_v11 = vpop.permute.xlu1 %100  ;;  %v95_v12 = vpop.permute.xlu0 %94 }
  0xde   :  { %v86_v9 = vpop.f32.mrb[0].mxu0 }
  0xdf   :  { %97 = vrot.lane.b32.xlu1 %v86_v9, %s167_s21  ;;  %91 = vrot.lane.b32.xlu0 %v86_v9, %s168_s22  ;;  %v146_v10 = vpop.f32.mrb[1].mxu0 }
  0xe3   :  { %103 = vrot.lane.b32.xlu0 %v86_v9, %s166_s20  ;;  %106 = vrot.lane.b32.xlu1 %v11_v7, %s169_s1 }
  0xe7   :  { %109 = vrot.lane.b32.xlu0 %v86_v9, %s170_s0 }
 0x151   :  { %v98_v13 = vpop.permute.xlu1 %97  ;;  %v92_v14 = vpop.permute.xlu0 %91 }
 0x152   :  { %v113_v15 = vsel %vm112_vm2, %v11_v7, %v92_v14 }
 0x153   :  { %v114_v16 = vsel %vm16_vm1, %v113_v15, %v95_v12 }
 0x154   :  { %v116_v17 = vsel %vm115_vm3, %v114_v16, %v98_v13 }
 0x155   :  { %v118_v18 = vsel %vm117_vm4, %v116_v17, %v101_v11  ;;  %v104_v19 = vpop.permute.xlu0 %103  ;;  %v107_v21 = vpop.permute.xlu1 %106 }
 0x156   :  { %v120_v20 = vsel %vm119_vm5, %v118_v18, %v104_v19 }
 0x157   :  { %v122_v22 = vsel %vm121_vm6, %v120_v20, %v107_v21 }
 0x159   :  { %v110_v23 = vpop.permute.xlu0 %109 }
 0x15a   :  { %v124_v24 = vsel %vm123_vm7, %v122_v22, %v110_v23 }
 0x15b   :  { %125 = vst [vmem:[%s208_s2] sm:$0xf] %v124_v24 }

</bundles_post_ra>
